<compile_context>
chip_gen: v7x
topology: tpu7x:2x2x1
jax: 0.10.0
libtpu: 0.0.40
codegen_flags: <defaults>
</compile_context>

<pallas_src>
import jax
import jax.numpy as jnp
from jax import lax
from jax.experimental import pallas as pl
from jax.experimental.pallas import tpu as pltpu

N_EMBD = 384           # fixed by the PyTorch source
HEAD_SIZE = 64         # head_size passed to Head(head_size)


def head_kernel(x_ref, wk_ref, wq_ref, wv_ref, o_ref):
    # x_ref : (B_blk, T, C)   f32
    # w*_ref: (C, HS)         bf16   (wq already carries the 1/sqrt(HS) scale)
    # o_ref : (B_blk, T, HS)  f32
    b_blk, t, c = x_ref.shape
    hs = wk_ref.shape[1]

    # ---- shared projections on the flattened batch (tall-M matmuls) -------
    # (b, t, c) -> (b*t, c) only merges leading dims: layout-free reshape.
    x = x_ref[...].reshape(b_blk * t, c).astype(jnp.bfloat16)
    q = jnp.dot(x, wq_ref[...], preferred_element_type=jnp.float32)
    k = jnp.dot(x, wk_ref[...], preferred_element_type=jnp.float32)
    v = jnp.dot(x, wv_ref[...], preferred_element_type=jnp.float32)

    q = q.reshape(b_blk, t, hs).astype(jnp.bfloat16)
    k = k.reshape(b_blk, t, hs).astype(jnp.bfloat16)
    v = v.reshape(b_blk, t, hs).astype(jnp.bfloat16)

    # ---- causal scores + softmax (f32) -------------------------------------
    row = lax.broadcasted_iota(jnp.int32, (t, t), 0)
    col = lax.broadcasted_iota(jnp.int32, (t, t), 1)
    causal = (col <= row)[None, :, :]

    s = jnp.einsum("bqd,bkd->bqk", q, k, preferred_element_type=jnp.float32)
    s = jnp.where(causal, s, -jnp.inf)
    m = jnp.max(s, axis=-1, keepdims=True)                   # diag always valid
    e = jnp.exp(s - m)                                        # (B_blk, T, T)
    inv = pl.reciprocal(jnp.sum(e, axis=-1, keepdims=True), approx=True)

    # ---- PV matmul; 1/sum folded into the small (T, HS) output -------------
    out = jnp.einsum("bqk,bkd->bqd", e.astype(jnp.bfloat16), v,
                     preferred_element_type=jnp.float32)
    o_ref[...] = (out * inv).astype(o_ref.dtype)


def head_forward(x, wk, wq, wv, *, block_b=None):
    """Pallas forward of Head: x (B, T, C) -> (B, T, head_size)."""
    B, T, C = x.shape
    assert C == N_EMBD
    assert T % 8 == 0, "T must be sublane-aligned (multiple of 8)"
    HS = wk.shape[1]
    scale = HS ** -0.5

    if block_b is None:
        # keep >= 2 grid steps when possible so v7x can use both TensorCores
        block_b = B // 2 if (B >= 2 and B % 2 == 0) else B
    assert B % block_b == 0
    grid = (B // block_b,)

    # One-time bf16 cast of the weights (halves weight DMA bytes, bf16 MXU
    # path).  The attention scale is fused into the wq cast for free.
    wk_b = wk.astype(jnp.bfloat16)
    wq_b = (wq * scale).astype(jnp.bfloat16)
    wv_b = wv.astype(jnp.bfloat16)

    w_spec = lambda w: pl.BlockSpec(w.shape, lambda b: (0, 0))

    return pl.pallas_call(
        head_kernel,
        out_shape=jax.ShapeDtypeStruct((B, T, HS), jnp.float32),
        grid_spec=pltpu.PrefetchScalarGridSpec(
            num_scalar_prefetch=0,
            grid=grid,
            in_specs=[
                pl.BlockSpec((block_b, T, C), lambda b: (b, 0, 0)),
                w_spec(wk_b), w_spec(wq_b), w_spec(wv_b),
            ],
            out_specs=pl.BlockSpec((block_b, T, HS), lambda b: (b, 0, 0)),
        ),
        compiler_params=pltpu.CompilerParams(
            dimension_semantics=("parallel",),
            vmem_limit_bytes=32 << 20,
        ),
    )(x, wk_b, wq_b, wv_b)


def head_reference(x, wk, wq, wv):
    """Pure-JAX f32 reference of Head.forward (dropout = identity)."""
    B, T, C = x.shape
    hs = wk.shape[1]
    q = jnp.einsum("btc,ch->bth", x, wq)
    k = jnp.einsum("btc,ch->bth", x, wk)
    v = jnp.einsum("btc,ch->bth", x, wv)
    s = jnp.einsum("bqd,bkd->bqk", q, k) * hs ** -0.5
    causal = jnp.tril(jnp.ones((T, T), bool))[None]
    s = jnp.where(causal, s, -jnp.inf)
    p = jax.nn.softmax(s, axis=-1)
    return jnp.einsum("bqk,bkd->bqd", p, v)


if __name__ == "__main__":
    key = jax.random.PRNGKey(0)
    kx, kk, kq, kv = jax.random.split(key, 4)

    B, T = 4, 16                       # small shapes; T <= block_size (128)
    w_scale = 0.02
    x = jax.random.normal(kx, (B, T, N_EMBD), jnp.float32)
    wk = jax.random.normal(kk, (N_EMBD, HEAD_SIZE), jnp.float32) * w_scale
    wq = jax.random.normal(kq, (N_EMBD, HEAD_SIZE), jnp.float32) * w_scale
    wv = jax.random.normal(kv, (N_EMBD, HEAD_SIZE), jnp.float32) * w_scale

    out = head_forward(x, wk, wq, wv)
    out = jax.block_until_ready(out)

    ref = head_reference(x, wk, wq, wv)
    assert out.shape == (B, T, HEAD_SIZE)
    max_err = float(jnp.max(jnp.abs(out - ref)))
    # bf16 matmul inputs + approx reciprocal => loosened tolerance vs f32 ref
    assert jnp.allclose(out, ref, atol=2e-2, rtol=2e-2), f"mismatch: {max_err}"

    print("KERNEL_OK")
</pallas_src>

<mosaic_0001>
module attributes {stable_mosaic.version = 11 : i64} {
  func.func @head_kernel(%arg0: i32, %arg1: memref<2x16x384xf32, #tpu.memory_space<vmem>>, %arg2: memref<384x64xbf16, #tpu.memory_space<vmem>>, %arg3: memref<384x64xbf16, #tpu.memory_space<vmem>>, %arg4: memref<384x64xbf16, #tpu.memory_space<vmem>>, %arg5: memref<2x16x64xf32, #tpu.memory_space<vmem>>) attributes {dimension_semantics = [#tpu.dimension_semantics<parallel>], iteration_bounds = array<i64: 2>, scalar_prefetch = 0 : i64, scratch_operands = 0 : i64, tpu.core_type = #tpu.core_type<tc>, window_params = [{transform_indices = @transform_0, window_bounds = array<i64: 2, 16, 384>}, {pipeline_mode = #tpu.pipeline_mode<synchronous>, transform_indices = @transform_1, window_bounds = array<i64: 384, 64>}, {pipeline_mode = #tpu.pipeline_mode<synchronous>, transform_indices = @transform_2, window_bounds = array<i64: 384, 64>}, {pipeline_mode = #tpu.pipeline_mode<synchronous>, transform_indices = @transform_3, window_bounds = array<i64: 384, 64>}, {transform_indices = @transform_4, window_bounds = array<i64: 2, 16, 64>}]} {
    %c0 = arith.constant 0 : index
    %c0_0 = arith.constant 0 : index
    %c0_1 = arith.constant 0 : index
    %0 = vector.load %arg1[%c0, %c0_0, %c0_1] : memref<2x16x384xf32, #tpu.memory_space<vmem>>, vector<2x16x384xf32>
    %1 = vector.shape_cast %0 : vector<2x16x384xf32> to vector<32x384xf32>
    %2 = arith.truncf %1 : vector<32x384xf32> to vector<32x384xbf16>
    %c0_2 = arith.constant 0 : index
    %c0_3 = arith.constant 0 : index
    %3 = vector.load %arg3[%c0_2, %c0_3] : memref<384x64xbf16, #tpu.memory_space<vmem>>, vector<384x64xbf16>
    %cst = arith.constant dense<0.000000e+00> : vector<32x64xf32>
    %4 = tpu.matmul %2, %3, %cst {dimension_numbers = #tpu.dot_dimension_numbers<[1], [0], [0], [1], [0, 0, 1, 1], [], []>} : vector<32x384xbf16>, vector<384x64xbf16>, vector<32x64xf32> -> vector<32x64xf32>
    %c0_4 = arith.constant 0 : index
    %c0_5 = arith.constant 0 : index
    %5 = vector.load %arg2[%c0_4, %c0_5] : memref<384x64xbf16, #tpu.memory_space<vmem>>, vector<384x64xbf16>
    %cst_6 = arith.constant dense<0.000000e+00> : vector<32x64xf32>
    %6 = tpu.matmul %2, %5, %cst_6 {dimension_numbers = #tpu.dot_dimension_numbers<[1], [0], [0], [1], [0, 0, 1, 1], [], []>} : vector<32x384xbf16>, vector<384x64xbf16>, vector<32x64xf32> -> vector<32x64xf32>
    %c0_7 = arith.constant 0 : index
    %c0_8 = arith.constant 0 : index
    %7 = vector.load %arg4[%c0_7, %c0_8] : memref<384x64xbf16, #tpu.memory_space<vmem>>, vector<384x64xbf16>
    %cst_9 = arith.constant dense<0.000000e+00> : vector<32x64xf32>
    %8 = tpu.matmul %2, %7, %cst_9 {dimension_numbers = #tpu.dot_dimension_numbers<[1], [0], [0], [1], [0, 0, 1, 1], [], []>} : vector<32x384xbf16>, vector<384x64xbf16>, vector<32x64xf32> -> vector<32x64xf32>
    %9 = vector.shape_cast %4 : vector<32x64xf32> to vector<2x16x64xf32>
    %10 = arith.truncf %9 : vector<2x16x64xf32> to vector<2x16x64xbf16>
    %11 = vector.shape_cast %6 : vector<32x64xf32> to vector<2x16x64xf32>
    %12 = arith.truncf %11 : vector<2x16x64xf32> to vector<2x16x64xbf16>
    %13 = vector.shape_cast %8 : vector<32x64xf32> to vector<2x16x64xf32>
    %14 = arith.truncf %13 : vector<2x16x64xf32> to vector<2x16x64xbf16>
    %15 = tpu.iota {dimensions = array<i32: 0>} : vector<16x16xi32>
    %16 = tpu.iota {dimensions = array<i32: 1>} : vector<16x16xi32>
    %17 = arith.cmpi sle, %16, %15 : vector<16x16xi32>
    %18 = vector.shape_cast %17 : vector<16x16xi1> to vector<1x16x16xi1>
    "tpu.trace_start"() <{level = 10 : i32, message = "bqd,bkd->bqk"}> : () -> ()
    %cst_10 = arith.constant dense<0.000000e+00> : vector<2x16x16xf32>
    %19 = tpu.matmul %10, %12, %cst_10 {dimension_numbers = #tpu.dot_dimension_numbers<[2], [2], [1], [1], [0, 0, 0, 1, 1, 1], [0], [0]>} : vector<2x16x64xbf16>, vector<2x16x64xbf16>, vector<2x16x16xf32> -> vector<2x16x16xf32>
    %cst_11 = arith.constant 0xFF800000 : f32
    "tpu.trace_stop"() : () -> ()
    %20 = vector.shape_cast %18 : vector<1x16x16xi1> to vector<1x16x16xi1>
    %21 = vector.broadcast %20 : vector<1x16x16xi1> to vector<2x16x16xi1>
    %22 = vector.broadcast %cst_11 : f32 to vector<2x16x16xf32>
    %23 = arith.select %21, %19, %22 : vector<2x16x16xi1>, vector<2x16x16xf32>
    %cst_12 = arith.constant dense<0xFF800000> : vector<2x16xf32>
    %24 = vector.multi_reduction <maximumf>, %23, %cst_12 [2] : vector<2x16x16xf32> to vector<2x16xf32>
    %25 = vector.shape_cast %24 : vector<2x16xf32> to vector<2x16x1xf32>
    %26 = vector.broadcast %25 : vector<2x16x1xf32> to vector<2x16x16xf32>
    %27 = arith.subf %23, %26 : vector<2x16x16xf32>
    %28 = math.exp %27 : vector<2x16x16xf32>
    %cst_13 = arith.constant dense<0.000000e+00> : vector<2x16xf32>
    %29 = vector.multi_reduction <add>, %28, %cst_13 [2] : vector<2x16x16xf32> to vector<2x16xf32>
    %30 = vector.shape_cast %29 : vector<2x16xf32> to vector<2x16x1xf32>
    %31 = tpu.reciprocal %30 {approx = true} : vector<2x16x1xf32> -> vector<2x16x1xf32>
    %32 = arith.truncf %28 : vector<2x16x16xf32> to vector<2x16x16xbf16>
    "tpu.trace_start"() <{level = 10 : i32, message = "bqk,bkd->bqd"}> : () -> ()
    %cst_14 = arith.constant dense<0.000000e+00> : vector<2x16x64xf32>
    %33 = tpu.matmul %32, %14, %cst_14 {dimension_numbers = #tpu.dot_dimension_numbers<[2], [1], [1], [2], [0, 0, 0, 1, 1, 2], [0], [0]>} : vector<2x16x16xbf16>, vector<2x16x64xbf16>, vector<2x16x64xf32> -> vector<2x16x64xf32>
    "tpu.trace_stop"() : () -> ()
    %34 = vector.broadcast %31 : vector<2x16x1xf32> to vector<2x16x64xf32>
    %35 = arith.mulf %33, %34 : vector<2x16x64xf32>
    %c0_15 = arith.constant 0 : index
    %c0_16 = arith.constant 0 : index
    %c0_17 = arith.constant 0 : index
    %36 = vector.load %arg5[%c0_15, %c0_16, %c0_17] : memref<2x16x64xf32, #tpu.memory_space<vmem>>, vector<2x16x64xf32>
    tpu.vector_store %arg5[%c0_15, %c0_16, %c0_17], %35 {strides = array<i32>} : memref<2x16x64xf32, #tpu.memory_space<vmem>>, vector<2x16x64xf32>,
    return
  }
  func.func @transform_0(%arg0: i32) -> (i32, i32, i32) {
    %c0_i32 = arith.constant 0 : i32
    %c0_i32_0 = arith.constant 0 : i32
    %c0_i32_1 = arith.constant 0 : i32
    return %arg0, %c0_i32, %c0_i32_0 : i32, i32, i32
  }
  func.func @transform_1(%arg0: i32) -> (i32, i32) {
    %c0_i32 = arith.constant 0 : i32
    %c0_i32_0 = arith.constant 0 : i32
    %c0_i32_1 = arith.constant 0 : i32
    return %c0_i32, %c0_i32_0 : i32, i32
  }
  func.func @transform_2(%arg0: i32) -> (i32, i32) {
    %c0_i32 = arith.constant 0 : i32
    %c0_i32_0 = arith.constant 0 : i32
    %c0_i32_1 = arith.constant 0 : i32
    return %c0_i32, %c0_i32_0 : i32, i32
  }
  func.func @transform_3(%arg0: i32) -> (i32, i32) {
    %c0_i32 = arith.constant 0 : i32
    %c0_i32_0 = arith.constant 0 : i32
    %c0_i32_1 = arith.constant 0 : i32
    return %c0_i32, %c0_i32_0 : i32, i32
  }
  func.func @transform_4(%arg0: i32) -> (i32, i32, i32) {
    %c0_i32 = arith.constant 0 : i32
    %c0_i32_0 = arith.constant 0 : i32
    %c0_i32_1 = arith.constant 0 : i32
    return %arg0, %c0_i32, %c0_i32_0 : i32, i32, i32
  }
}

</mosaic_0001>

<bundles_post_ra>
// kernel: tpu_custom_call.1
= control target key start
LH: loop header
LB: loop body
LE: loop exit
PB: predicated region body
PF: predicated region fallthrough
CT: control target
= control target key end

     0   :  { %9 = vsyncpa [#allocation3], 0  ;;  %s2334_s0 = inlined_call_operand.vmem [shape: f32[4,16,384], index: 0, kind: input, shape index: {}]   ;;  %s2335_s1 = inlined_call_operand.vmem [shape: bf16[384,64], index: 1, kind: input, shape index: {}]   ;;  %s2336_s2 = inlined_call_operand.vmem [shape: bf16[384,64], index: 2, kind: input, shape index: {}]   ;;  %s2337_s3 = inlined_call_operand.vmem [shape: bf16[384,64], index: 3, kind: input, shape index: {}]   ;;  %s2338_s4 = inlined_call_operand.hbm [shape: f32[4,16,64], index: 4, kind: output, shape index: {}]  }
   0x1   :  { %11 = vsyncpa [#allocation3 + $0x1], 0  ;;  %s1946_s15 = smov 0   ;;  %s1948_s16 = smov 0  }
   0x2   :  { %s1950_s17 = smov 0   ;;  %s1952_s18 = smov 0  }
   0x3 LB: > { %s1967_s19 = sadd.s32 4294967295, %s1914_s18   ;;  %s1423_s20 = sadd.s32 4294967294, %s1914_s18   ;;  %s1914_s18 = sphi %s1952_s18, %s2344_s18   ;;  %s1910_s17 = sphi %s1950_s17, %s2343_s17   ;;  %s1906_s16 = sphi %s1948_s16, %s2342_s16   ;;  %s1902_s15 = sphi %s1946_s15, %s2341_s15  }
   0x4   : > { %s1971_s21 = sadd.s32 1, %s1914_s18   ;;  %s113_s22 = sadd.s32 1, %s1910_s17 }
   0x5   : > { %s110_s23 = ssub.s32 %s1914_s18, %s1971_s21  ;;  %p123_p0 = scmp.ne.s32.totalorder %s1910_s17, %s1906_s16 }
   0x6   : > { %p111_p1 = scmp.eq.s32.totalorder %s110_s23, 0  ;;  %p124_p2 = scmp.eq.s32.totalorder %s1967_s19, 1 }
   0x7   : > { %p129_p3 = scmp.ne.s32.totalorder %s1906_s16, %s1902_s15  ;;  %p130_p4 = scmp.eq.s32.totalorder %s1423_s20, 1 }
   0x8   : > { %s1982_s24 = scalar_select %p111_p1, %s1910_s17, %s113_s22  }
   0x9   : > { %p1984_p5 = por %p124_p2, %p123_p0  ;;  %p1988_p6 = por %p130_p4, %p129_p3 }
   0xa   : > { %p1426_p7 = scmp.ge.s32.totalorder %s1914_s18, 1  ;;  %p167_p8 = scmp.lt.s32.totalorder %s1914_s18, 3 }
   0xc   : > { %p168_p9 = pnand %p1426_p7, %p167_p8 }
   0xd   : > { %v1764_v0 = vld [vmem:[%s2336_s2 + $0x40] sm:$0xff] (!%p168_p9)   ;;  %v1767_v3 = vld [vmem:[%s2336_s2 + $0x48] sm:$0xff] (!%p168_p9)   ;;  %v1770_v6 = vld [vmem:[%s2336_s2 + $0x50] sm:$0xff] (!%p168_p9)   ;;  %s1428_s20 = sshll.u32 (!%p168_p9), %s1967_s19, 1  ;;  %vm1917_vm0 = vmmov (!%p168_p9), 0   ;;  %vm1104_vm1 = vcmask (!%p168_p9), 523264  }
   0xe   : > { %171 = sbr.rel (%p168_p9) target bundleno = 923 (0x39b), region = 36  ;;  %v1765_v1 = vld [vmem:[%s2336_s2] sm:$0xff] (!%p168_p9)   ;;  %1514 = vmatprep.subr.bf16.mxu0 (!%p168_p9), %v1764_v0  ;;  %v1768_v4 = vld [vmem:[%s2336_s2 + $0x8] sm:$0xff] (!%p168_p9)   ;;  %v1771_v7 = vld [vmem:[%s2336_s2 + $0x10] sm:$0xff] (!%p168_p9)   ;;  %p195_p10 = scmp.lt.s32.totalorder (!%p168_p9), %s1428_s20, 3  ;;  %vm1207_vm3 = vcmask (!%p168_p9), 130048  }
   0xf   : > { %v1766_v2 = vld [vmem:[%s2336_s2 + $0x80] sm:$0xff] (!%p168_p9)   ;;  %1515 = vmatpush3.bf16.msra.mxu0 (!%p168_p9), %v1765_v1  ;;  %v1769_v5 = vld [vmem:[%s2336_s2 + $0x88] sm:$0xff] (!%p168_p9)   ;;  %v1772_v8 = vld [vmem:[%s2336_s2 + $0x90] sm:$0xff] (!%p168_p9)   ;;  %s191_s22 = sand.u32 (!%p168_p9), 1, %s1906_s16   ;;  %s1513_s29 = sshll.u32 (!%p168_p9), %s1967_s19, 9 }
  0x10   : > { %1636 = vmatprep.subr.bf16.mxu1 (!%p168_p9), %v1766_v2  ;;  %1516 = vmatprep.subr.bf16.mxu0 (!%p168_p9), %v1767_v3  ;;  %v1773_v9 = vld [vmem:[%s2336_s2 + $0x58] sm:$0xff] (!%p168_p9)   ;;  %v1776_v12 = vld [vmem:[%s2336_s2 + $0x60] sm:$0xff] (!%p168_p9)   ;;  %v1779_v15 = vld [vmem:[%s2336_s2 + $0x68] sm:$0xff] (!%p168_p9)   ;;  %s1427_s23 = sshll.u32 (!%p168_p9), %s191_s22, 5  ;;  %s2287_s5 = scalar_lea.hbm (!%p168_p9), %s2338_s4, %s1513_s29 }
  0x11   : > { %1637 = vmatpush3.bf16.msra.mxu1 (!%p168_p9), %v1766_v2  ;;  %v1774_v10 = vld [vmem:[%s2336_s2 + $0x18] sm:$0xff] (!%p168_p9)   ;;  %v1778_v13 = vld [vmem:[%s2336_s2 + $0xa0] sm:$0xff] (!%p168_p9)   ;;  %v1781_v16 = vld [vmem:[%s2336_s2 + $0xa8] sm:$0xff] (!%p168_p9)   ;;  %s2293_s19 = scalar_lea.sflag (!%p168_p9), [#allocation3], %s191_s22  ;;  %s1918_s7 = smov (!%p168_p9), [#allocation2]  }
  0x12   : > { %1638 = vmatprep.subr.bf16.mxu1 (!%p168_p9), %v1769_v5  ;;  %v1775_v11 = vld [vmem:[%s2336_s2 + $0x98] sm:$0xff] (!%p168_p9)   ;;  %v1777_v14 = vld [vmem:[%s2336_s2 + $0x20] sm:$0xff] (!%p168_p9)   ;;  %v1780_v17 = vld [vmem:[%s2336_s2 + $0x28] sm:$0xff] (!%p168_p9)   ;;  %s1856_s8 = sshll.u32 (!%p168_p9), %s1918_s7, 4  ;;  %s1857_s8 = int_to_ptr.vmem [resolvable:$false] %s1856_s8 }
  0x13   : > { %1517 = vmatpush3.bf16.msra.mxu0 (!%p168_p9), %v1768_v4  ;;  %v1782_v18 = vld [vmem:[%s2336_s2 + $0x70] sm:$0xff] (!%p168_p9)   ;;  %v1785_v21 = vld [vmem:[%s2336_s2 + $0x78] sm:$0xff] (!%p168_p9)   ;;  %v1788_v32 = vld [vmem:[%s2335_s1 + $0x40] sm:$0xff] (!%p168_p9)   ;;  %s1858_s9 = scalar_lea.vmem (!%p168_p9), %s1857_s8, 1024 }
  0x14   : > { %1518 = vmatprep.subr.bf16.mxu0 (!%p168_p9), %v1770_v6  ;;  %v1784_v19 = vld [vmem:[%s2336_s2 + $0xb0] sm:$0xff] (!%p168_p9)   ;;  %v1786_v24 = vld [vmem:[%s2336_s2 + $0x38] sm:$0xff] (!%p168_p9)   ;;  %v1790_v36 = vld [vmem:[%s2335_s1 + $0x80] sm:$0xff] (!%p168_p9)  }
  0x15   : > { %1639 = vmatpush3.bf16.msra.mxu1 %v1769_v5  ;;  %s2346_s20 = smov (!%p195_p10, %s1428_s20), 3  ;;  %v1783_v20 = vld [vmem:[%s2336_s2 + $0x30] sm:$0xff]   ;;  %v1787_v25 = vld [vmem:[%s2336_s2 + $0xb8] sm:$0xff]   ;;  %v1789_v37 = vld [vmem:[%s2335_s1] sm:$0xff]  }
  0x16   : > { %1640 = vmatprep.subr.bf16.mxu1 %v1772_v8  ;;  %s1720_s27 = smul.u32 48, %s2346_s20  ;;  %v1791_v39 = vld [vmem:[%s2335_s1 + $0x48] sm:$0xff]   ;;  %v1794_v47 = vld [vmem:[%s2335_s1 + $0x50] sm:$0xff]   ;;  %v1797_v51 = vld [vmem:[%s2335_s1 + $0x58] sm:$0xff]  }
  0x17   : > { %1519 = vmatpush3.bf16.msra.mxu0 %v1771_v7  ;;  %v1792_v41 = vld [vmem:[%s2335_s1 + $0x8] sm:$0xff]   ;;  %v1796_v49 = vld [vmem:[%s2335_s1 + $0x90] sm:$0xff]   ;;  %v1799_v52 = vld [vmem:[%s2335_s1 + $0x98] sm:$0xff]  }
  0x18   : > { %1520 = vmatprep.subr.bf16.mxu0 %v1773_v9  ;;  %s2055_s20 = scalar_lea.vmem %s2334_s0, %s1720_s27  ;;  %v1793_v42 = vld [vmem:[%s2335_s1 + $0x88] sm:$0xff]   ;;  %v1795_v50 = vld [vmem:[%s2335_s1 + $0x10] sm:$0xff]   ;;  %v1798_v53 = vld [vmem:[%s2335_s1 + $0x18] sm:$0xff]   ;;  %s193_s27 = scalar_lea.vmem [#allocation2], %s1427_s23 }
  0x19   : > { %1641 = vmatpush3.bf16.msra.mxu1 %v1772_v8  ;;  %v204_v22 = vld [vmem:[%s2055_s20 + $0x8] sm:$0xff]  ;;  %v207_v23 = vld [vmem:[%s2055_s20 + $0x20] sm:$0xff]  ;;  %v205_v28 = vld [vmem:[%s2055_s20 + $0x10] sm:$0xff]  ;;  %s1361_s28 = sshll.u32 %s193_s27, 4  ;;  %s2282_s28 = int_to_ptr.vmem [resolvable:$true] %s1361_s28 }
  0x1a   : > { %1642 = vmatprep.subr.bf16.mxu1 %v1775_v11  ;;  %v2074_v26 = vpack.c.bf16 %v207_v23, %v204_v22  ;;  %v203_v27 = vld [vmem:[%s2055_s20] sm:$0xff]  ;;  %v208_v29 = vld [vmem:[%s2055_s20 + $0x28] sm:$0xff]  ;;  %v206_v30 = vld [vmem:[%s2055_s20 + $0x18] sm:$0xff]  ;;  %s1852_s6 = scalar_lea.vmem %s2282_s28, 512  ;;  %p1859_p0 = scmp.lt.s32.totalorder %s2282_s28, %s1857_s8 }
  0x1b   : > { %1521 = vmatpush3.bf16.msra.mxu0 %v1774_v10  ;;  %v2081_v31 = vpack.c.bf16 %v208_v29, %v205_v28  ;;  %v211_v33 = vld [vmem:[%s2055_s20 + $0x40] sm:$0xff]  ;;  %v214_v34 = vld [vmem:[%s2055_s20 + $0x58] sm:$0xff]  ;;  %v2089_v35 = vpack.c.bf16 %v206_v30, %v203_v27  ;;  %v213_v43 = vld [vmem:[%s2055_s20 + $0x50] sm:$0xff]  ;;  %p1853_p11 = scmp.ne.s32.totalorder %s2282_s28, %s1852_s6  ;;  %p1860_p1 = scmp.lt.s32.totalorder %s1858_s9, %s1852_s6 }
  0x1c   : > { %1522 = vmatprep.subr.bf16.mxu0 %v1776_v12  ;;  %445 = vmatprep.mubr.bf16.mxu0 %v2074_v26  ;;  %v2097_v38 = vpack.c.bf16 %v214_v34, %v211_v33  ;;  %v210_v40 = vld [vmem:[%s2055_s20 + $0x38] sm:$0xff]  ;;  %v209_v45 = vld [vmem:[%s2055_s20 + $0x30] sm:$0xff]  ;;  %v212_v46 = vld [vmem:[%s2055_s20 + $0x48] sm:$0xff] }
  0x1d   : > { %1643 = vmatpush3.bf16.msra.mxu1 %v1775_v11  ;;  %1652 = vmatprep.mubr.bf16.mxu1 %v2081_v31  ;;  %v2111_v44 = vpack.c.bf16 %v213_v43, %v210_v40  ;;  %v2120_v48 = vpack.c.bf16 %v212_v46, %v209_v45  ;;  %v1800_v54 = vld [vmem:[%s2335_s1 + $0x60] sm:$0xff]   ;;  %v1803_v57 = vld [vmem:[%s2335_s1 + $0x68] sm:$0xff]   ;;  %v1806_v60 = vld [vmem:[%s2335_s1 + $0x70] sm:$0xff]   ;;  %p1854_p12 = pnand %p1853_p11, %p1984_p5  ;;  %p1861_p2 = por %p1860_p1, %p1859_p0 }
  0x1e   : > { %1644 = vmatprep.subr.bf16.mxu1 %v1778_v13  ;;  %v1802_v55 = vld [vmem:[%s2335_s1 + $0xa0] sm:$0xff]   ;;  %v1804_v58 = vld [vmem:[%s2335_s1 + $0x28] sm:$0xff]   ;;  %v1808_v61 = vld [vmem:[%s2335_s1 + $0xb0] sm:$0xff]  }
  0x1f   : > { %1523 = vmatpush3.bf16.msra.mxu0 %v1777_v14  ;;  %v1801_v56 = vld [vmem:[%s2335_s1 + $0x20] sm:$0xff]   ;;  %v1805_v59 = vld [vmem:[%s2335_s1 + $0xa8] sm:$0xff]   ;;  %v1807_v62 = vld [vmem:[%s2335_s1 + $0x30] sm:$0xff]   ;;  %p1855_p13 = pneg %p1854_p12 }
  0x20   : > { %1524 = vmatprep.subr.bf16.mxu0 %v1779_v15  ;;  %v1809_v63 = vld [vmem:[%s2335_s1 + $0x78] sm:$0xff]   ;;  %v1812_v2 = vld [vmem:[%s2337_s3 + $0x80] sm:$0xff]   ;;  %v1813_v5 = vld [vmem:[%s2337_s3 + $0x88] sm:$0xff]  }
  0x21   : > { %1645 = vmatpush3.bf16.msra.mxu1 %v1778_v13  ;;  %v1811_v0 = vld [vmem:[%s2335_s1 + $0xb8] sm:$0xff]   ;;  %v1814_v3 = vld [vmem:[%s2337_s3 + $0x40] sm:$0xff]   ;;  %v1817_v6 = vld [vmem:[%s2337_s3 + $0x48] sm:$0xff]   ;;  %p1862_p3 = pnand %p1861_p2, %p1855_p13 }
  0x22   : > { %1646 = vmatprep.subr.bf16.mxu1 %v1781_v16  ;;  %v1810_v1 = vld [vmem:[%s2335_s1 + $0x38] sm:$0xff]   ;;  %v1815_v4 = vld [vmem:[%s2337_s3] sm:$0xff]   ;;  %v1818_v7 = vld [vmem:[%s2337_s3 + $0x8] sm:$0xff]  }
  0x23   : > { %1525 = vmatpush3.bf16.msra.mxu0 %v1780_v17  ;;  %v1816_v8 = vld [vmem:[%s2337_s3 + $0x90] sm:$0xff]   ;;  %v1819_v11 = vld [vmem:[%s2337_s3 + $0x98] sm:$0xff]   ;;  %v1822_v13 = vld [vmem:[%s2337_s3 + $0xa0] sm:$0xff]  }
  0x24   : > { %1526 = vmatprep.subr.bf16.mxu0 %v1782_v18  ;;  %v1820_v9 = vld [vmem:[%s2337_s3 + $0x50] sm:$0xff]   ;;  %v1823_v12 = vld [vmem:[%s2337_s3 + $0x58] sm:$0xff]   ;;  %v1826_v15 = vld [vmem:[%s2337_s3 + $0x60] sm:$0xff]  }
  0x25   : > { %1647 = vmatpush3.bf16.msra.mxu1 %v1781_v16  ;;  %v1821_v10 = vld [vmem:[%s2337_s3 + $0x10] sm:$0xff]   ;;  %v1824_v14 = vld [vmem:[%s2337_s3 + $0x18] sm:$0xff]   ;;  %v1827_v16 = vld [vmem:[%s2337_s3 + $0x20] sm:$0xff]  }
  0x26   : > { %1648 = vmatprep.subr.bf16.mxu1 %v1784_v19  ;;  %v1825_v17 = vld [vmem:[%s2337_s3 + $0xa8] sm:$0xff]   ;;  %v1833_v22 = vld [vmem:[%s2337_s3 + $0x30] sm:$0xff]   ;;  %v1831_v23 = vld [vmem:[%s2337_s3 + $0xb8] sm:$0xff]  }
  0x27   : > { %1527 = vmatpush3.bf16.msra.mxu0 %v1783_v20  ;;  %v1829_v18 = vld [vmem:[%s2337_s3 + $0x68] sm:$0xff]   ;;  %v1828_v20 = vld [vmem:[%s2337_s3 + $0xb0] sm:$0xff]  }
  0x28   : > { %1528 = vmatprep.subr.bf16.mxu0 %v1785_v21  ;;  %v1832_v21 = vld [vmem:[%s2337_s3 + $0x70] sm:$0xff]  }
  0x29   : > { %1649 = vmatpush3.bf16.msra.mxu1 %v1784_v19  ;;  %v1830_v19 = vld [vmem:[%s2337_s3 + $0x28] sm:$0xff]  }
  0x2a   : > { %1650 = vmatprep.subr.bf16.mxu1 %v1787_v25 }
  0x2b   : > { %1529 = vmatpush3.bf16.msra.mxu0 %v1786_v24  ;;  %v1834_v24 = vld [vmem:[%s2337_s3 + $0x78] sm:$0xff]  }
  0x2c   : > { %1552 = vmatprep.subr.bf16.mxu0 %v1788_v32 }
  0x2d   : > { %1651 = vmatpush3.bf16.msra.mxu1 %v1787_v25  ;;  %v1835_v25 = vld [vmem:[%s2337_s3 + $0x38] sm:$0xff]  }
  0x2e   : > { %446 = vmatmul.mubr.bf16.vlgmr.msra.gmra.mrb[0].mxu0 %v2089_v35  ;;  %1656 = vmatprep.subr.bf16.mxu1 %v1790_v36 }
  0x2f   : > { %1553 = vmatpush3.bf16.msra.mxu0 %v1789_v37  ;;  %453 = vmatprep.mubr.bf16.mxu0 %v2111_v44 }
  0x30   : > { %1653 = vmatmul.mubr.bf16.vlgmr.msra.gmra.mrb[0].mxu1 %v2097_v38  ;;  %1554 = vmatprep.subr.bf16.mxu0 %v1791_v39 }
  0x31   : > { %1657 = vmatpush3.bf16.msra.mxu1 %v1790_v36  ;;  %1672 = vmatprep.mubr.bf16.mxu1 %v2081_v31 }
  0x32   : > { %1658 = vmatprep.subr.bf16.mxu1 %v1793_v42 }
  0x33   : > { %1555 = vmatpush3.bf16.msra.mxu0 %v1792_v41 }
  0x34   : > { %1556 = vmatprep.subr.bf16.mxu0 %v1794_v47 }
  0x35   : > { %1659 = vmatpush3.bf16.msra.mxu1 %v1793_v42 }
  0x36   : > { %454 = vmatmul.mubr.bf16.gmra.mrb[4].mxu0 %v2120_v48  ;;  %1660 = vmatprep.subr.bf16.mxu1 %v1796_v49 }
  0x37   : > { %1557 = vmatpush3.bf16.msra.mxu0 %v1795_v50  ;;  %735 = vmatprep.mubr.bf16.mxu0 %v2074_v26 }
  0x38   : > { %1558 = vmatprep.subr.bf16.mxu0 %v1797_v51 }
  0x39   : > { %1661 = vmatpush3.bf16.msra.mxu1 %v1796_v49 }
  0x3a   : > { %1662 = vmatprep.subr.bf16.mxu1 %v1799_v52 }
  0x3b   : > { %1559 = vmatpush3.bf16.msra.mxu0 %v1798_v53 }
  0x3c   : > { %1560 = vmatprep.subr.bf16.mxu0 %v1800_v54 }
  0x3d   : > { %1663 = vmatpush3.bf16.msra.mxu1 %v1799_v52 }
  0x3e   : > { %1664 = vmatprep.subr.bf16.mxu1 %v1802_v55 }
  0x3f   : > { %1561 = vmatpush3.bf16.msra.mxu0 %v1801_v56 }
  0x40   : > { %1562 = vmatprep.subr.bf16.mxu0 %v1803_v57 }
  0x41   : > { %1665 = vmatpush3.bf16.msra.mxu1 %v1802_v55 }
  0x42   : > { %1666 = vmatprep.subr.bf16.mxu1 %v1805_v59 }
  0x43   : > { %1563 = vmatpush3.bf16.msra.mxu0 %v1804_v58 }
  0x44   : > { %1564 = vmatprep.subr.bf16.mxu0 %v1806_v60 }
  0x45   : > { %1667 = vmatpush3.bf16.msra.mxu1 %v1805_v59 }
  0x46   : > { %1668 = vmatprep.subr.bf16.mxu1 %v1808_v61 }
  0x47   : > { %1565 = vmatpush3.bf16.msra.mxu0 %v1807_v62 }
  0x48   : > { %1566 = vmatprep.subr.bf16.mxu0 %v1809_v63 }
  0x49   : > { %1669 = vmatpush3.bf16.msra.mxu1 %v1808_v61 }
  0x4a   : > { %1670 = vmatprep.subr.bf16.mxu1 %v1811_v0 }
  0x4b   : > { %1567 = vmatpush3.bf16.msra.mxu0 %v1810_v1 }
  0x4c   : > { %1590 = vmatprep.subr.bf16.mxu0 %v1814_v3 }
  0x4d   : > { %1671 = vmatpush3.bf16.msra.mxu1 %v1811_v0 }
  0x4e   : > { %736 = vmatmul.mubr.bf16.vlgmr.msra.gmra.mrb[8].mxu0 %v2089_v35  ;;  %1676 = vmatprep.subr.bf16.mxu1 %v1812_v2 }
  0x4f   : > { %743 = vmatprep.mubr.bf16.mxu0 %v2111_v44  ;;  %1591 = vmatpush3.bf16.msra.mxu0 %v1815_v4 }
  0x50   : > { %1673 = vmatmul.mubr.bf16.vlgmr.msra.gmra.mrb[4].mxu1 %v2097_v38  ;;  %1592 = vmatprep.subr.bf16.mxu0 %v1817_v6 }
  0x51   : > { %1692 = vmatprep.mubr.bf16.mxu1 %v2081_v31  ;;  %1677 = vmatpush3.bf16.msra.mxu1 %v1812_v2 }
  0x52   : > { %1678 = vmatprep.subr.bf16.mxu1 %v1813_v5 }
  0x53   : > { %1593 = vmatpush3.bf16.msra.mxu0 %v1818_v7 }
  0x54   : > { %1594 = vmatprep.subr.bf16.mxu0 %v1820_v9 }
  0x55   : > { %1679 = vmatpush3.bf16.msra.mxu1 %v1813_v5 }
  0x56   : > { %744 = vmatmul.mubr.bf16.gmra.mrb[12].mxu0 %v2120_v48  ;;  %1680 = vmatprep.subr.bf16.mxu1 %v1816_v8 }
  0x57   : > { %1025 = vmatprep.mubr.bf16.mxu0 %v2074_v26  ;;  %1595 = vmatpush3.bf16.msra.mxu0 %v1821_v10  ;;  %v1916_v26 = vmov 0.0  }
  0x58   : > { %1596 = vmatprep.subr.bf16.mxu0 %v1823_v12 }
  0x59   : > { %1681 = vmatpush3.bf16.msra.mxu1 %v1816_v8 }
  0x5a   : > { %1682 = vmatprep.subr.bf16.mxu1 %v1819_v11 }
  0x5b   : > { %1597 = vmatpush3.bf16.msra.mxu0 %v1824_v14 }
  0x5c   : > { %1598 = vmatprep.subr.bf16.mxu0 %v1826_v15 }
  0x5d   : > { %1683 = vmatpush3.bf16.msra.mxu1 %v1819_v11 }
  0x5e   : > { %1684 = vmatprep.subr.bf16.mxu1 %v1822_v13 }
  0x5f   : > { %1599 = vmatpush3.bf16.msra.mxu0 %v1827_v16 }
  0x60   : > { %1600 = vmatprep.subr.bf16.mxu0 %v1829_v18 }
  0x61   : > { %1685 = vmatpush3.bf16.msra.mxu1 %v1822_v13 }
  0x62   : > { %1686 = vmatprep.subr.bf16.mxu1 %v1825_v17 }
  0x63   : > { %1601 = vmatpush3.bf16.msra.mxu0 %v1830_v19 }
  0x64   : > { %1602 = vmatprep.subr.bf16.mxu0 %v1832_v21 }
  0x65   : > { %1687 = vmatpush3.bf16.msra.mxu1 %v1825_v17 }
  0x66   : > { %1688 = vmatprep.subr.bf16.mxu1 %v1828_v20 }
  0x67   : > { %1603 = vmatpush3.bf16.msra.mxu0 %v1833_v22 }
  0x68   : > { %1604 = vmatprep.subr.bf16.mxu0 %v1834_v24 }
  0x69   : > { %1689 = vmatpush3.bf16.msra.mxu1 %v1828_v20 }
  0x6a   : > { %1690 = vmatprep.subr.bf16.mxu1 %v1831_v23 }
  0x6b   : > { %1605 = vmatpush3.bf16.msra.mxu0 %v1835_v25 }
  0x6c   : > { %1702 = vmatprep.subr.bf16.mxu0 %v1916_v26 }
  0x6d   : > { %1691 = vmatpush3.bf16.msra.mxu1 %v1831_v23 }
  0x6e   : > { %1026 = vmatmul.mubr.bf16.vlgmr.msra.gmra.mrb[16].mxu0 %v2089_v35  ;;  %1696 = vmatprep.subr.bf16.mxu1 %v1916_v26 }
  0x6f   : > { %1033 = vmatprep.mubr.bf16.mxu0 %v2111_v44 }
  0x70   : > { %1693 = vmatmul.mubr.bf16.vlgmr.msra.gmra.mrb[8].mxu1 %v2097_v38 }
  0x71   : > { %1698 = vmatprep.mubr.msk.bf16.mxu1 %vm1917_vm0, %v1916_v26 }
  0x76   : > { %1034 = vmatmul.mubr.bf16.gmra.mrb[20].mxu0 %v2120_v48 }
  0x77   : > { %1704 = vmatprep.mubr.msk.bf16.mxu0 %vm1917_vm0, %v1916_v26 }
 0x101   : > { %v1530_v27 = vpop.f32.mrb[0].mxu0 }
 0x102   : > { %v1531_v28 = vpop.f32.mrb[1].mxu0 }
 0x103   : > { %v1532_v29 = vadd.f32 %v1531_v28, %v1530_v27  ;;  %v1533_v30 = vpop.f32.mrb[2].mxu0  ;;  %v1654_v31 = vpop.f32.mrb[0].mxu1 }
 0x104   : > { %v1534_v32 = vpop.f32.mrb[3].mxu0  ;;  %v496_v33 = vpop.f32.mrb[1].mxu1 }
 0x105   : > { %v1535_v34 = vadd.f32 %v1534_v32, %v1533_v30  ;;  %v497_v35 = vadd.f32 %v1532_v29, %v496_v33  ;;  %v1655_v36 = vpop.f32.mrb[2].mxu1 }
 0x106   : > { %v499_v37 = vpop.f32.mrb[3].mxu1 }
 0x107   : > { %v500_v38 = vadd.f32 %v1535_v34, %v499_v37 }
 0x109   : > { %v1091_v39 = vpack.c.bf16 %v500_v38, %v497_v35  ;;  %v1536_v40 = vpop.f32.mrb[4].mxu0 }
 0x10a   : > { %v1537_v41 = vpop.f32.mrb[5].mxu0 }
 0x10b   : > { %v1538_v42 = vadd.f32 %v1537_v41, %v1536_v40  ;;  %v1539_v43 = vpop.f32.mrb[6].mxu0 }
 0x10c   : > { %v1540_v44 = vpop.f32.mrb[7].mxu0 }
 0x10d   : > { %v505_v45 = vadd.f32 %v1654_v31, %v1538_v42  ;;  %v1541_v46 = vadd.f32 %v1540_v44, %v1539_v43  ;;  %v1097_v31 = vlaneseq }
 0x10f   : > { %v508_v47 = vadd.f32 %v1655_v36, %v1541_v46  ;;  %v1098_v32 = vshrl.u32 %v1097_v31, 7  ;;  %v1101_v33 = vand.u32 127, %v1097_v31 }
 0x111   : > { %v1092_v48 = vpack.c.bf16 %v508_v47, %v505_v45  ;;  %v1099_v34 = vadd.s32 8, %v1098_v32  ;;  %vm1102_vm2 = vcmp.le.s32.totalorder %v1101_v33, %v1098_v32 }
 0x113   : > { %vm1103_vm4 = vcmp.le.s32.totalorder %v1101_v33, %v1099_v34 }
 0x121   : > { %v1568_v49 = vpop.f32.mrb[8].mxu0 }
 0x122   : > { %v1569_v50 = vpop.f32.mrb[9].mxu0 }
 0x123   : > { %v1570_v51 = vadd.f32 %v1569_v50, %v1568_v49  ;;  %v1571_v52 = vpop.f32.mrb[10].mxu0  ;;  %v1674_v53 = vpop.f32.mrb[4].mxu1 }
 0x124   : > { %v1572_v54 = vpop.f32.mrb[11].mxu0  ;;  %v786_v55 = vpop.f32.mrb[5].mxu1 }
 0x125   : > { %v1573_v56 = vadd.f32 %v1572_v54, %v1571_v52  ;;  %v787_v57 = vadd.f32 %v1570_v51, %v786_v55  ;;  %v1675_v58 = vpop.f32.mrb[6].mxu1 }
 0x126   : > { %v789_v59 = vpop.f32.mrb[7].mxu1 }
 0x127   : > { %v790_v60 = vadd.f32 %v1573_v56, %v789_v59 }
 0x129   : > { %v1093_v61 = vpack.c.bf16 %v790_v60, %v787_v57  ;;  %v1574_v62 = vpop.f32.mrb[12].mxu0 }
 0x12a   : > { %v1575_v63 = vpop.f32.mrb[13].mxu0 }
 0x12b   : > { %v1576_v0 = vadd.f32 %v1575_v63, %v1574_v62  ;;  %v1577_v1 = vpop.f32.mrb[14].mxu0  ;;  %v1109_v2 = vsel %vm1104_vm1, %v1093_v61, 0 }
 0x12c   : > { %v1578_v3 = vpop.f32.mrb[15].mxu0  ;;  %1697 = vmatpush3.bf16.xpose.msra.mxu1 %v1109_v2 }
 0x12d   : > { %v795_v4 = vadd.f32 %v1674_v53, %v1576_v0  ;;  %v1579_v5 = vadd.f32 %v1578_v3, %v1577_v1  ;;  %1708 = vmatprep.subr.bf16.mxu1 %v1916_v26 }
 0x12f   : > { %v798_v6 = vadd.f32 %v1675_v58, %v1579_v5 }
 0x131   : > { %v1094_v7 = vpack.c.bf16 %v798_v6, %v795_v4 }
 0x133   : > { %1699 = vmatmul.mubr.msk.bf16.vlgmr.msra.gmra.mrb[12].mxu1 %vm1104_vm1, %v1091_v39  ;;  %v1156_v8 = vsel %vm1104_vm1, %v1094_v7, 0 }
 0x134   : > { %1703 = vmatpush3.bf16.xpose.msra.mxu0 %v1156_v8  ;;  %1710 = vmatprep.mubr.msk.bf16.mxu1 %vm1917_vm0, %v1916_v26 }
 0x135   : > { %1714 = vmatprep.subr.bf16.mxu0 %v1916_v26 }
 0x13b   : > { %1705 = vmatmul.mubr.msk.bf16.vlgmr.msra.gmra.mrb[24].mxu0 %vm1104_vm1, %v1092_v48 }
 0x13c   : > { %1716 = vmatprep.mubr.msk.bf16.mxu0 %vm1917_vm0, %v1916_v26 }
 0x141   : > { %v1606_v10 = vpop.f32.mrb[16].mxu0 }
 0x142   : > { %v1607_v12 = vpop.f32.mrb[17].mxu0 }
 0x143   : > { %v1694_v9 = vpop.f32.mrb[8].mxu1  ;;  %v1608_v14 = vadd.f32 %v1607_v12, %v1606_v10  ;;  %v1609_v15 = vpop.f32.mrb[18].mxu0 }
 0x144   : > { %v1076_v11 = vpop.f32.mrb[9].mxu1  ;;  %v1610_v18 = vpop.f32.mrb[19].mxu0 }
 0x145   : > { %v1695_v13 = vpop.f32.mrb[10].mxu1  ;;  %v1077_v17 = vadd.f32 %v1608_v14, %v1076_v11  ;;  %v1611_v19 = vadd.f32 %v1610_v18, %v1609_v15 }
 0x146   : > { %v1079_v16 = vpop.f32.mrb[11].mxu1 }
 0x147   : > { %v1080_v20 = vadd.f32 %v1611_v19, %v1079_v16 }
 0x149   : > { %v1612_v21 = vpop.f32.mrb[20].mxu0  ;;  %v1095_v23 = vpack.c.bf16 %v1080_v20, %v1077_v17 }
 0x14a   : > { %v1613_v22 = vpop.f32.mrb[21].mxu0 }
 0x14b   : > { %v1615_v24 = vpop.f32.mrb[22].mxu0  ;;  %v1614_v27 = vadd.f32 %v1613_v22, %v1612_v21  ;;  %1709 = vmatpush3.bf16.msra.mxu1 %v1095_v23 }
 0x14c   : > { %v1616_v25 = vpop.f32.mrb[23].mxu0 }
 0x14d   : > { %v1617_v28 = vadd.f32 %v1616_v25, %v1615_v24  ;;  %v1085_v26 = vadd.f32 %v1694_v9, %v1614_v27 }
 0x14f   : > { %v1088_v29 = vadd.f32 %v1695_v13, %v1617_v28 }
 0x151   : > { %v1096_v30 = vpack.c.bf16 %v1088_v29, %v1085_v26 }
 0x153   : > { %1715 = vmatpush3.bf16.msra.mxu0 %v1096_v30 }
 0x206   : > { %v1145_v35 = vpop.f32.mrb[12].mxu1 }
 0x207   : > { %v1203_v36 = vsel %vm1102_vm2, %v1145_v35, -inf  ;;  %v1700_v37 = vpop.f32.mrb[13].mxu1 }
 0x208   : > { %v1148_v38 = vpop.f32.mrb[14].mxu1  ;;  %v1208_v39 = vsel %vm1207_vm3, %v1203_v36, -inf }
 0x209   : > { %v1204_v40 = vsel %vm1103_vm4, %v1148_v38, -inf  ;;  %1209 = vmax.xlane.f32.xlu0 %v1208_v39  ;;  %v1701_v41 = vpop.f32.mrb[15].mxu1 }
 0x20a   : > { %v1211_v42 = vsel %vm1207_vm3, %v1204_v40, -inf }
 0x20d   : > { %1212 = vmax.xlane.f32.xlu0 %v1211_v42 }
 0x20e   : > { %v1192_v43 = vpop.f32.mrb[24].mxu0 }
 0x20f   : > { %v1205_v44 = vsel %vm1102_vm2, %v1192_v43, -inf  ;;  %v1706_v45 = vpop.f32.mrb[25].mxu0 }
 0x210   : > { %v1195_v46 = vpop.f32.mrb[26].mxu0  ;;  %v1214_v47 = vsel %vm1207_vm3, %v1205_v44, -inf }
 0x211   : > { %v1206_v48 = vsel %vm1103_vm4, %v1195_v46, -inf  ;;  %1215 = vmax.xlane.f32.xlu1 %v1214_v47  ;;  %v1707_v49 = vpop.f32.mrb[27].mxu0 }
 0x212   : > { %v1217_v50 = vsel %vm1207_vm3, %v1206_v48, -inf }
 0x215   : > { %1218 = vmax.xlane.f32.xlu1 %v1217_v50 }
 0x296   : > { %v1210_v51 = vpop.xlane.xlu0 %1209 }
 0x297   : > { %v1220_v52 = vsub.f32 %v1203_v36, %v1210_v51 }
 0x299   : > { %v1224_v53 = vmul.f32 1.442695, %v1220_v52 }
 0x29a   : > { %v1213_v54 = vpop.xlane.xlu0 %1212 }
 0x29b   : > { %1836 = vpow2.f32 %v1224_v53  ;;  %v1221_v55 = vsub.f32 %v1204_v40, %v1213_v54 }
 0x29d   : > { %v1226_v56 = vmul.f32 1.442695, %v1221_v55 }
 0x29e   : > { %v1216_v57 = vpop.xlane.xlu1 %1215 }
 0x29f   : > { %1838 = vpow2.f32 %v1226_v56  ;;  %v1222_v58 = vsub.f32 %v1205_v44, %v1216_v57 }
 0x2a1   : > { %v1228_v59 = vmul.f32 1.442695, %v1222_v58 }
 0x2a2   : > { %v1219_v60 = vpop.xlane.xlu1 %1218 }
 0x2a3   : > { %1840 = vpow2.f32 %v1228_v59  ;;  %v1223_v61 = vsub.f32 %v1206_v48, %v1219_v60 }
 0x2a5   : > { %v1837_v62 = vpop.eup %1836  ;;  %v1230_v63 = vmul.f32 1.442695, %v1223_v61 }
 0x2a6   : > { %v1232_v0 = vsel %vm1207_vm3, %v1837_v62, 0.0 }
 0x2a7   : > { %1842 = vpow2.f32 %v1230_v63  ;;  %1233 = vadd.xlane.f32.xlu0 %v1232_v0 }
 0x2a9   : > { %v1839_v1 = vpop.eup %1838 }
 0x2aa   : > { %v1235_v2 = vsel %vm1207_vm3, %v1839_v1, 0.0  ;;  %v1248_v3 = vpack.c.bf16 %v1839_v1, %v1837_v62 }
 0x2ab   : > { %1236 = vadd.xlane.f32.xlu1 %v1235_v2 }
 0x2ac   : > { %1711 = vmatmul.mubr.msk.bf16.vlgmr.msra.gmra.mrb[16].mxu1 %vm1207_vm3, %v1248_v3 }
 0x2ad   : > { %v1841_v4 = vpop.eup %1840 }
 0x2ae   : > { %v1238_v5 = vsel %vm1207_vm3, %v1841_v4, 0.0 }
 0x2af   : > { %1239 = vadd.xlane.f32.xlu0 %v1238_v5 }
 0x2b1   : > { %v1843_v6 = vpop.eup %1842 }
 0x2b2   : > { %v1241_v7 = vsel %vm1207_vm3, %v1843_v6, 0.0  ;;  %v1249_v8 = vpack.c.bf16 %v1843_v6, %v1841_v4 }
 0x2b3   : > { %1242 = vadd.xlane.f32.xlu1 %v1241_v7 }
 0x2b4   : > { %1717 = vmatmul.mubr.msk.bf16.vlgmr.msra.gmra.mrb[28].mxu0 %vm1207_vm3, %v1249_v8 }
 0x334   : > { %v1234_v9 = vpop.xlane.xlu0 %1233 }
 0x335   : > { %1844 = vrcp.f32 %v1234_v9 }
 0x338   : > { %v1237_v10 = vpop.xlane.xlu1 %1236 }
 0x339   : > { %1846 = vrcp.f32 %v1237_v10 }
 0x33c   : > { %v1240_v11 = vpop.xlane.xlu0 %1239 }
 0x33d   : > { %1848 = vrcp.f32 %v1240_v11 }
 0x33f   : > { %v1845_v13 = vpop.eup %1844 }
 0x340   : > { %v1243_v12 = vpop.xlane.xlu1 %1242 }
 0x341   : > { %1850 = vrcp.f32 %v1243_v12 }
 0x343   : > { %v1847_v17 = vpop.eup %1846 }
 0x347   : > { %v1849_v21 = vpop.eup %1848 }
 0x34b   : > { %v1851_v25 = vpop.eup %1850 }
 0x37f   : > { %v1287_v14 = vpop.f32.mrb[16].mxu1 }
 0x380   : > { %v1338_v15 = vmul.f32 %v1845_v13, %v1287_v14  ;;  %v1712_v16 = vpop.f32.mrb[17].mxu1 }
 0x381   : > { %v1290_v18 = vpop.f32.mrb[18].mxu1 }
 0x382   : > { %1342 = vst.msk [vmem:[%s193_s27] sm:$0xff] %vm1104_vm1, %v1338_v15  ;;  %v1339_v19 = vmul.f32 %v1847_v17, %v1290_v18  ;;  %v1713_v20 = vpop.f32.mrb[19].mxu1 }
 0x384   : > { %1343 = vst.msk [vmem:[%s193_s27 + $0x8] sm:$0xff] %vm1104_vm1, %v1339_v19 }
 0x387   : > { %v1331_v22 = vpop.f32.mrb[28].mxu0 }
 0x388   : > { %v1340_v23 = vmul.f32 %v1849_v21, %v1331_v22  ;;  %v1718_v24 = vpop.f32.mrb[29].mxu0 }
 0x389   : > { %v1334_v27 = vpop.f32.mrb[30].mxu0 }
 0x38a   : > { %1344 = vst.msk [vmem:[%s193_s27 + $0x10] sm:$0xff] %vm1104_vm1, %v1340_v23  ;;  %v1341_v28 = vmul.f32 %v1851_v25, %v1334_v27  ;;  %v1719_v26 = vpop.f32.mrb[31].mxu0 }
 0x38c   : > { %1345 = vst.msk [vmem:[%s193_s27 + $0x18] sm:$0xff] %vm1104_vm1, %v1341_v28 }
 0x38d   : > { %1865 = shalt.err (!%p1862_p3)
}
 0x38e   : > { %s1866_s10 = scalar_lea.hbm %s2287_s5, 512  ;;  %s1870_s13 = scalar_lea.hbm %s2338_s4, 1024 }
 0x38f   : > { %p1867_p4 = scmp.ne.s32.totalorder %s2287_s5, %s1866_s10  ;;  %p1871_p9 = scmp.lt.u32.totalorder %s2287_s5, %s2338_s4 }
 0x390   : > { %p1872_p10 = scmp.lt.u32.totalorder %s1870_s13, %s1866_s10  ;;  %p1874_p12 = scmp.lt.u32.totalorder %s1866_s10, %s2287_s5 }
 0x391   : > { %p1868_p7 = pnand %p1867_p4, %p1984_p5 }
 0x392   : > { %p1873_p11 = por %p1872_p10, %p1871_p9 }
 0x393   : > { %p1869_p8 = pneg %p1868_p7 }
 0x394   : > { %p1875_p13 = por %p1874_p12, %p1873_p11 }
 0x396   : > { %p1876_p0 = pnand %p1875_p13, %p1869_p8 }
 0x398   : > { %1879 = shalt.err (!%p1876_p0)
}
 0x399   : > { %s1919_s23 = smov 128   ;;  %s1920_s27 = smov 8  }
 0x39a   : > { %1721 = dma.vmem_to_hbm [thread:$0]  (%p1984_p5), %s2282_s28, 512, %s2287_s5, %s2293_s19, %s1919_s23, %s1919_s23, %s1920_s27  }
 0x39b PF: > { %p1727_p1 = scmp.ge.s32.totalorder %s1914_s18, 2  ;;  %s1376_s29 = sand.u32 1, %s1902_s15  }
 0x39c   : > { %s1377_s20 = scalar_lea.sflag [#allocation3], %s1376_s29 }
 0x39d   : > { %p1724_p2 = pnand %p1727_p1, %p1988_p6 }
 0x39f   : > { %1897 = dma.done.wait (!%p1724_p2), %s1377_s20, 512  }
 0x3a0   : > { %1899 = vsyncadd (!%p1724_p2), %s1377_s20, 4294966784  ;;  %p14_p3 = scmp.ge.s32.totalorder %s1971_s21, 4   ;;  %s2341_s15 = smov %s1906_s16 }
 0x3a1   : > { %s2342_s16 = smov %s1910_s17  ;;  %s2343_s17 = smov %s1982_s24 }
 0x3a2   : > { %s2344_s18 = smov %s1971_s21  ;;  %16 = sbr.rel (!%p14_p3) target bundleno = 3 (0x3), region = 71 }
 0x3a9   :  { %1382 = vsyncpa [#allocation3], 1 }
 0x3aa   :  { %1384 = vsyncpa [#allocation3 + $0x1], 1 }

</bundles_post_ra>
